<compile_context>
chip_gen: v7x
topology: tpu7x:2x2x1
jax: 0.10.0
libtpu: 0.0.40
codegen_flags: <defaults>
</compile_context>

<pallas_src>
import math

import jax
import jax.numpy as jnp
from jax.experimental import pallas as pl
from jax.experimental.pallas import tpu as pltpu

# ----------------------------- configuration -------------------------------
D_MODEL = 32
D_HIDDEN = 64
N_HEADS = 4
SEQ = 8
BATCH = 2
LN_EPS = 1e-5


def _layer_norm(x, gamma, beta):
    # x: (S, D); gamma/beta: (1, D)
    mean = jnp.mean(x, axis=-1, keepdims=True)
    var = jnp.mean((x - mean) ** 2, axis=-1, keepdims=True)
    inv = jax.lax.rsqrt(var + LN_EPS)
    return (x - mean) * inv * gamma + beta


def encoder_layer_kernel(x_ref, w_attn_ref, w_ffn_ref, b_qkv_ref, vec_ref, out_ref):
    S, D = x_ref.shape[1], x_ref.shape[2]
    H = w_attn_ref.shape[1]
    dk = w_attn_ref.shape[3]
    Hff = w_ffn_ref.shape[2]
    scale = 1.0 / math.sqrt(dk)
    f32 = jnp.float32

    x = x_ref[0]                                   # (S, D) f32

    # -------- unpack host-packed parameters (leading-index reads are cheap) --
    wq3 = w_attn_ref[0]                            # (H, D, dk)
    wk3 = w_attn_ref[1]                            # (H, D, dk)
    wv3 = w_attn_ref[2]                            # (H, D, dk)
    wo3t = w_attn_ref[3]                           # (H, D, dk)  == per-head wo^T
    w1 = w_ffn_ref[0]                              # (D, Hff)
    w2t = w_ffn_ref[1]                             # (D, Hff)    == w2^T
    bq3 = b_qkv_ref[0]                             # (H, dk)
    bk3 = b_qkv_ref[1]
    bv3 = b_qkv_ref[2]
    bo = vec_ref[0:1, 0:D]                         # (1, D)
    g1 = vec_ref[1:2, 0:D]
    be1 = vec_ref[2:3, 0:D]
    b1 = vec_ref[3:4, 0:Hff]                       # (1, Hff)
    b2 = vec_ref[4:5, 0:D]
    g2 = vec_ref[5:6, 0:D]
    be2 = vec_ref[6:7, 0:D]

    # -------- multi-head self-attention (heads on a leading batch axis) -----
    xb = jnp.broadcast_to(x[None, :, :], (H, S, D))                              # (H, S, D)
    q3 = jnp.einsum('hsn,hnd->hsd', xb, wq3, preferred_element_type=f32) + bq3[:, None, :]
    k3 = jnp.einsum('hsn,hnd->hsd', xb, wk3, preferred_element_type=f32) + bk3[:, None, :]
    v3 = jnp.einsum('hsn,hnd->hsd', xb, wv3, preferred_element_type=f32) + bv3[:, None, :]

    scores = jnp.einsum('hqd,hkd->hqk', q3, k3, preferred_element_type=f32) * scale  # (H, S, S)
    m = jnp.max(scores, axis=-1, keepdims=True)
    e = jnp.exp(scores - m)
    denom = jnp.sum(e, axis=-1, keepdims=True)
    p = e * pl.reciprocal(denom, approx=False)     # one reciprocal, then multiply
    ctx = jnp.einsum('hqk,hkd->hqd', p, v3, preferred_element_type=f32)               # (H, S, dk)

    # per-head output projection, summed over heads ( == concat-then-matmul )
    proj = jnp.einsum('hsd,hnd->hsn', ctx, wo3t, preferred_element_type=f32)          # (H, S, D)
    attn = jnp.sum(proj, axis=0) + bo                                                  # (S, D)

    # -------- residual + LayerNorm1 (dropout1 = identity) --------------------
    x1 = _layer_norm(x + attn, g1, be1)

    # -------- position-wise feed-forward (dropout inside FFN = identity) -----
    h1 = jnp.dot(x1, w1, preferred_element_type=f32) + b1
    h1 = jnp.maximum(h1, 0.0)                      # ReLU
    ff = jnp.einsum('sh,dh->sd', h1, w2t, preferred_element_type=f32) + b2

    # -------- residual + LayerNorm2 (dropout2 = identity) --------------------
    x2 = _layer_norm(x1 + ff, g2, be2)

    out_ref[0] = x2.astype(out_ref.dtype)


# ----------------------------- host-side packing ----------------------------
def pack_params(params, n_heads):
    D = params["wq"].shape[0]
    Hff = params["w1"].shape[1]
    dk = D // n_heads

    def heads_cols(w):   # (D, D) -> (H, D, dk) where [h] = w[:, h*dk:(h+1)*dk]
        return w.reshape(D, n_heads, dk).transpose(1, 0, 2)

    # wo3t[h, n, d] = wo[h*dk + d, n]  (per-head rows of wo, transposed)
    wo3t = params["wo"].reshape(n_heads, dk, D).transpose(0, 2, 1)

    w_attn = jnp.stack([heads_cols(params["wq"]), heads_cols(params["wk"]),
                        heads_cols(params["wv"]), wo3t], axis=0)        # (4, H, D, dk)
    w_ffn = jnp.stack([params["w1"], params["w2"].T], axis=0)           # (2, D, Hff)

    def bias_heads(b):   # (1, D) -> (H, dk)
        return b.reshape(n_heads, dk)

    b_qkv = jnp.stack([bias_heads(params["bq"]), bias_heads(params["bk"]),
                       bias_heads(params["bv"])], axis=0)               # (3, H, dk)

    width = max(D, Hff)

    def row(v):
        v = v.reshape(1, -1)
        return jnp.pad(v, ((0, 0), (0, width - v.shape[1])))

    vec = jnp.concatenate([row(params["bo"]), row(params["g1"]), row(params["be1"]),
                           row(params["b1"]), row(params["b2"]), row(params["g2"]),
                           row(params["be2"])], axis=0)                 # (7, width)
    return w_attn, w_ffn, b_qkv, vec


def encoder_layer(x, params, *, n_heads: int = N_HEADS):
    B, S, D = x.shape
    Hff = params["w1"].shape[1]
    dk = D // n_heads

    w_attn, w_ffn, b_qkv, vec = pack_params(params, n_heads)
    width = vec.shape[1]

    grid_spec = pltpu.PrefetchScalarGridSpec(
        num_scalar_prefetch=0,
        grid=(B,),
        in_specs=[
            pl.BlockSpec((1, S, D), lambda b: (b, 0, 0)),             # x (per-batch block)
            pl.BlockSpec((4, n_heads, D, dk), lambda b: (0, 0, 0, 0)),  # packed attn weights
            pl.BlockSpec((2, D, Hff), lambda b: (0, 0, 0)),           # packed FFN weights
            pl.BlockSpec((3, n_heads, dk), lambda b: (0, 0, 0)),      # packed QKV biases
            pl.BlockSpec((7, width), lambda b: (0, 0)),               # packed misc vectors
        ],
        out_specs=pl.BlockSpec((1, S, D), lambda b: (b, 0, 0)),
    )

    return pl.pallas_call(
        encoder_layer_kernel,
        out_shape=jax.ShapeDtypeStruct((B, S, D), x.dtype),
        grid_spec=grid_spec,
        compiler_params=pltpu.CompilerParams(
            dimension_semantics=("parallel",)),
    )(x, w_attn, w_ffn, b_qkv, vec)


# ----------------------------- init & reference -----------------------------
def init_params(key, d_model=D_MODEL, d_hidden=D_HIDDEN):
    ks = jax.random.split(key, 6)
    scale = 0.02

    def w(k, shape):
        return (scale * jax.random.normal(k, shape)).astype(jnp.float32)

    return {
        "wq": w(ks[0], (d_model, d_model)), "bq": jnp.zeros((1, d_model), jnp.float32),
        "wk": w(ks[1], (d_model, d_model)), "bk": jnp.zeros((1, d_model), jnp.float32),
        "wv": w(ks[2], (d_model, d_model)), "bv": jnp.zeros((1, d_model), jnp.float32),
        "wo": w(ks[3], (d_model, d_model)), "bo": jnp.zeros((1, d_model), jnp.float32),
        "g1": jnp.ones((1, d_model), jnp.float32), "be1": jnp.zeros((1, d_model), jnp.float32),
        "w1": w(ks[4], (d_model, d_hidden)), "b1": jnp.zeros((1, d_hidden), jnp.float32),
        "w2": w(ks[5], (d_hidden, d_model)), "b2": jnp.zeros((1, d_model), jnp.float32),
        "g2": jnp.ones((1, d_model), jnp.float32), "be2": jnp.zeros((1, d_model), jnp.float32),
    }


def _reference(x, p, n_heads=N_HEADS):
    """Pure-JAX reference of the same forward pass (sanity check)."""
    B, S, D = x.shape
    dk = D // n_heads

    def ln(v, g, b):
        m = jnp.mean(v, -1, keepdims=True)
        var = jnp.mean((v - m) ** 2, -1, keepdims=True)
        return (v - m) / jnp.sqrt(var + LN_EPS) * g + b

    q = x @ p["wq"] + p["bq"]
    k = x @ p["wk"] + p["bk"]
    v = x @ p["wv"] + p["bv"]
    q = q.reshape(B, S, n_heads, dk).transpose(0, 2, 1, 3)
    k = k.reshape(B, S, n_heads, dk).transpose(0, 2, 1, 3)
    v = v.reshape(B, S, n_heads, dk).transpose(0, 2, 1, 3)
    s = jnp.einsum("bhqd,bhkd->bhqk", q, k) / math.sqrt(dk)
    a = jax.nn.softmax(s, axis=-1)
    o = jnp.einsum("bhqk,bhkd->bhqd", a, v).transpose(0, 2, 1, 3).reshape(B, S, D)
    o = o @ p["wo"] + p["bo"]
    x1 = ln(x + o, p["g1"], p["be1"])
    h = jnp.maximum(x1 @ p["w1"] + p["b1"], 0.0)
    ff = h @ p["w2"] + p["b2"]
    return ln(x1 + ff, p["g2"], p["be2"])


if __name__ == "__main__":
    key = jax.random.PRNGKey(0)
    kx, kp = jax.random.split(key)
    x = jax.random.normal(kx, (BATCH, SEQ, D_MODEL), dtype=jnp.float32)
    params = init_params(kp)

    out = jax.block_until_ready(encoder_layer(x, params))

    ref = _reference(x, params)
    assert out.shape == (BATCH, SEQ, D_MODEL)
    assert jnp.allclose(out, ref, atol=1e-4, rtol=1e-4), "mismatch vs reference"
    print("KERNEL_OK")
</pallas_src>

<mosaic_0001>
module attributes {stable_mosaic.version = 11 : i64} {
  func.func @encoder_layer_kernel(%arg0: i32, %arg1: memref<1x8x32xf32, #tpu.memory_space<vmem>>, %arg2: memref<4x4x32x8xf32, #tpu.memory_space<vmem>>, %arg3: memref<2x32x64xf32, #tpu.memory_space<vmem>>, %arg4: memref<3x4x8xf32, #tpu.memory_space<vmem>>, %arg5: memref<7x64xf32, #tpu.memory_space<vmem>>, %arg6: memref<1x8x32xf32, #tpu.memory_space<vmem>>) attributes {dimension_semantics = [#tpu.dimension_semantics<parallel>], iteration_bounds = array<i64: 2>, scalar_prefetch = 0 : i64, scratch_operands = 0 : i64, tpu.core_type = #tpu.core_type<tc>, window_params = [{transform_indices = @transform_0, window_bounds = array<i64: 1, 8, 32>}, {pipeline_mode = #tpu.pipeline_mode<synchronous>, transform_indices = @transform_1, window_bounds = array<i64: 4, 4, 32, 8>}, {pipeline_mode = #tpu.pipeline_mode<synchronous>, transform_indices = @transform_2, window_bounds = array<i64: 2, 32, 64>}, {pipeline_mode = #tpu.pipeline_mode<synchronous>, transform_indices = @transform_3, window_bounds = array<i64: 3, 4, 8>}, {pipeline_mode = #tpu.pipeline_mode<synchronous>, transform_indices = @transform_4, window_bounds = array<i64: 7, 64>}, {transform_indices = @transform_5, window_bounds = array<i64: 1, 8, 32>}]} {
    %c0 = arith.constant 0 : index
    %c0_0 = arith.constant 0 : index
    %c0_1 = arith.constant 0 : index
    %0 = vector.load %arg1[%c0, %c0_0, %c0_1] : memref<1x8x32xf32, #tpu.memory_space<vmem>>, vector<1x8x32xf32>
    %1 = vector.shape_cast %0 : vector<1x8x32xf32> to vector<8x32xf32>
    %c0_2 = arith.constant 0 : index
    %c0_3 = arith.constant 0 : index
    %c0_4 = arith.constant 0 : index
    %c0_5 = arith.constant 0 : index
    %2 = vector.load %arg2[%c0_2, %c0_3, %c0_4, %c0_5] : memref<4x4x32x8xf32, #tpu.memory_space<vmem>>, vector<1x4x32x8xf32>
    %3 = vector.shape_cast %2 : vector<1x4x32x8xf32> to vector<4x32x8xf32>
    %c1 = arith.constant 1 : index
    %c0_6 = arith.constant 0 : index
    %c0_7 = arith.constant 0 : index
    %c0_8 = arith.constant 0 : index
    %4 = vector.load %arg2[%c1, %c0_6, %c0_7, %c0_8] : memref<4x4x32x8xf32, #tpu.memory_space<vmem>>, vector<1x4x32x8xf32>
    %5 = vector.shape_cast %4 : vector<1x4x32x8xf32> to vector<4x32x8xf32>
    %c2 = arith.constant 2 : index
    %c0_9 = arith.constant 0 : index
    %c0_10 = arith.constant 0 : index
    %c0_11 = arith.constant 0 : index
    %6 = vector.load %arg2[%c2, %c0_9, %c0_10, %c0_11] : memref<4x4x32x8xf32, #tpu.memory_space<vmem>>, vector<1x4x32x8xf32>
    %7 = vector.shape_cast %6 : vector<1x4x32x8xf32> to vector<4x32x8xf32>
    %c3 = arith.constant 3 : index
    %c0_12 = arith.constant 0 : index
    %c0_13 = arith.constant 0 : index
    %c0_14 = arith.constant 0 : index
    %8 = vector.load %arg2[%c3, %c0_12, %c0_13, %c0_14] : memref<4x4x32x8xf32, #tpu.memory_space<vmem>>, vector<1x4x32x8xf32>
    %9 = vector.shape_cast %8 : vector<1x4x32x8xf32> to vector<4x32x8xf32>
    %c0_15 = arith.constant 0 : index
    %c0_16 = arith.constant 0 : index
    %c0_17 = arith.constant 0 : index
    %10 = vector.load %arg3[%c0_15, %c0_16, %c0_17] : memref<2x32x64xf32, #tpu.memory_space<vmem>>, vector<1x32x64xf32>
    %11 = vector.shape_cast %10 : vector<1x32x64xf32> to vector<32x64xf32>
    %c1_18 = arith.constant 1 : index
    %c0_19 = arith.constant 0 : index
    %c0_20 = arith.constant 0 : index
    %12 = vector.load %arg3[%c1_18, %c0_19, %c0_20] : memref<2x32x64xf32, #tpu.memory_space<vmem>>, vector<1x32x64xf32>
    %13 = vector.shape_cast %12 : vector<1x32x64xf32> to vector<32x64xf32>
    %c0_21 = arith.constant 0 : index
    %c0_22 = arith.constant 0 : index
    %c0_23 = arith.constant 0 : index
    %14 = vector.load %arg4[%c0_21, %c0_22, %c0_23] : memref<3x4x8xf32, #tpu.memory_space<vmem>>, vector<1x4x8xf32>
    %15 = vector.shape_cast %14 : vector<1x4x8xf32> to vector<4x8xf32>
    %c1_24 = arith.constant 1 : index
    %c0_25 = arith.constant 0 : index
    %c0_26 = arith.constant 0 : index
    %16 = vector.load %arg4[%c1_24, %c0_25, %c0_26] : memref<3x4x8xf32, #tpu.memory_space<vmem>>, vector<1x4x8xf32>
    %17 = vector.shape_cast %16 : vector<1x4x8xf32> to vector<4x8xf32>
    %c2_27 = arith.constant 2 : index
    %c0_28 = arith.constant 0 : index
    %c0_29 = arith.constant 0 : index
    %18 = vector.load %arg4[%c2_27, %c0_28, %c0_29] : memref<3x4x8xf32, #tpu.memory_space<vmem>>, vector<1x4x8xf32>
    %19 = vector.shape_cast %18 : vector<1x4x8xf32> to vector<4x8xf32>
    %c0_30 = arith.constant 0 : index
    %c0_31 = arith.constant 0 : index
    %20 = vector.load %arg5[%c0_30, %c0_31] : memref<7x64xf32, #tpu.memory_space<vmem>>, vector<1x32xf32>
    %c1_32 = arith.constant 1 : index
    %c0_33 = arith.constant 0 : index
    %21 = vector.load %arg5[%c1_32, %c0_33] : memref<7x64xf32, #tpu.memory_space<vmem>>, vector<1x32xf32>
    %c2_34 = arith.constant 2 : index
    %c0_35 = arith.constant 0 : index
    %22 = vector.load %arg5[%c2_34, %c0_35] : memref<7x64xf32, #tpu.memory_space<vmem>>, vector<1x32xf32>
    %c3_36 = arith.constant 3 : index
    %c0_37 = arith.constant 0 : index
    %23 = vector.load %arg5[%c3_36, %c0_37] : memref<7x64xf32, #tpu.memory_space<vmem>>, vector<1x64xf32>
    %c4 = arith.constant 4 : index
    %c0_38 = arith.constant 0 : index
    %24 = vector.load %arg5[%c4, %c0_38] : memref<7x64xf32, #tpu.memory_space<vmem>>, vector<1x32xf32>
    %c5 = arith.constant 5 : index
    %c0_39 = arith.constant 0 : index
    %25 = vector.load %arg5[%c5, %c0_39] : memref<7x64xf32, #tpu.memory_space<vmem>>, vector<1x32xf32>
    %c6 = arith.constant 6 : index
    %c0_40 = arith.constant 0 : index
    %26 = vector.load %arg5[%c6, %c0_40] : memref<7x64xf32, #tpu.memory_space<vmem>>, vector<1x32xf32>
    %27 = vector.shape_cast %1 : vector<8x32xf32> to vector<1x8x32xf32>
    %28 = vector.shape_cast %27 : vector<1x8x32xf32> to vector<1x8x32xf32>
    %29 = vector.broadcast %28 : vector<1x8x32xf32> to vector<4x8x32xf32>
    "tpu.trace_start"() <{level = 10 : i32, message = "hsn,hnd->hsd"}> : () -> ()
    %cst = arith.constant dense<0.000000e+00> : vector<4x8x8xf32>
    %30 = tpu.matmul %29, %3, %cst {dimension_numbers = #tpu.dot_dimension_numbers<[2], [1], [1], [2], [0, 0, 0, 1, 1, 2], [0], [0]>} : vector<4x8x32xf32>, vector<4x32x8xf32>, vector<4x8x8xf32> -> vector<4x8x8xf32>
    "tpu.trace_stop"() : () -> ()
    %31 = vector.shape_cast %15 : vector<4x8xf32> to vector<4x1x8xf32>
    %32 = vector.broadcast %31 : vector<4x1x8xf32> to vector<4x8x8xf32>
    %33 = arith.addf %30, %32 : vector<4x8x8xf32>
    "tpu.trace_start"() <{level = 10 : i32, message = "hsn,hnd->hsd"}> : () -> ()
    %cst_41 = arith.constant dense<0.000000e+00> : vector<4x8x8xf32>
    %34 = tpu.matmul %29, %5, %cst_41 {dimension_numbers = #tpu.dot_dimension_numbers<[2], [1], [1], [2], [0, 0, 0, 1, 1, 2], [0], [0]>} : vector<4x8x32xf32>, vector<4x32x8xf32>, vector<4x8x8xf32> -> vector<4x8x8xf32>
    "tpu.trace_stop"() : () -> ()
    %35 = vector.shape_cast %17 : vector<4x8xf32> to vector<4x1x8xf32>
    %36 = vector.broadcast %35 : vector<4x1x8xf32> to vector<4x8x8xf32>
    %37 = arith.addf %34, %36 : vector<4x8x8xf32>
    "tpu.trace_start"() <{level = 10 : i32, message = "hsn,hnd->hsd"}> : () -> ()
    %cst_42 = arith.constant dense<0.000000e+00> : vector<4x8x8xf32>
    %38 = tpu.matmul %29, %7, %cst_42 {dimension_numbers = #tpu.dot_dimension_numbers<[2], [1], [1], [2], [0, 0, 0, 1, 1, 2], [0], [0]>} : vector<4x8x32xf32>, vector<4x32x8xf32>, vector<4x8x8xf32> -> vector<4x8x8xf32>
    "tpu.trace_stop"() : () -> ()
    %39 = vector.shape_cast %19 : vector<4x8xf32> to vector<4x1x8xf32>
    %40 = vector.broadcast %39 : vector<4x1x8xf32> to vector<4x8x8xf32>
    %41 = arith.addf %38, %40 : vector<4x8x8xf32>
    "tpu.trace_start"() <{level = 10 : i32, message = "hqd,hkd->hqk"}> : () -> ()
    %cst_43 = arith.constant dense<0.000000e+00> : vector<4x8x8xf32>
    %42 = tpu.matmul %33, %37, %cst_43 {dimension_numbers = #tpu.dot_dimension_numbers<[2], [2], [1], [1], [0, 0, 0, 1, 1, 1], [0], [0]>} : vector<4x8x8xf32>, vector<4x8x8xf32>, vector<4x8x8xf32> -> vector<4x8x8xf32>
    "tpu.trace_stop"() : () -> ()
    %cst_44 = arith.constant 0.353553385 : f32
    %43 = vector.broadcast %cst_44 : f32 to vector<4x8x8xf32>
    %44 = arith.mulf %42, %43 : vector<4x8x8xf32>
    %cst_45 = arith.constant dense<0xFF800000> : vector<4x8xf32>
    %45 = vector.multi_reduction <maximumf>, %44, %cst_45 [2] : vector<4x8x8xf32> to vector<4x8xf32>
    %46 = vector.shape_cast %45 : vector<4x8xf32> to vector<4x8x1xf32>
    %47 = vector.broadcast %46 : vector<4x8x1xf32> to vector<4x8x8xf32>
    %48 = arith.subf %44, %47 : vector<4x8x8xf32>
    %49 = math.exp %48 : vector<4x8x8xf32>
    %cst_46 = arith.constant dense<0.000000e+00> : vector<4x8xf32>
    %50 = vector.multi_reduction <add>, %49, %cst_46 [2] : vector<4x8x8xf32> to vector<4x8xf32>
    %51 = vector.shape_cast %50 : vector<4x8xf32> to vector<4x8x1xf32>
    %52 = tpu.reciprocal %51 : vector<4x8x1xf32> -> vector<4x8x1xf32>
    %53 = vector.broadcast %52 : vector<4x8x1xf32> to vector<4x8x8xf32>
    %54 = arith.mulf %49, %53 : vector<4x8x8xf32>
    "tpu.trace_start"() <{level = 10 : i32, message = "hqk,hkd->hqd"}> : () -> ()
    %cst_47 = arith.constant dense<0.000000e+00> : vector<4x8x8xf32>
    %55 = tpu.matmul %54, %41, %cst_47 {dimension_numbers = #tpu.dot_dimension_numbers<[2], [1], [1], [2], [0, 0, 0, 1, 1, 2], [0], [0]>} : vector<4x8x8xf32>, vector<4x8x8xf32>, vector<4x8x8xf32> -> vector<4x8x8xf32>
    "tpu.trace_stop"() : () -> ()
    "tpu.trace_start"() <{level = 10 : i32, message = "hsd,hnd->hsn"}> : () -> ()
    %cst_48 = arith.constant dense<0.000000e+00> : vector<4x8x32xf32>
    %56 = tpu.matmul %55, %9, %cst_48 {dimension_numbers = #tpu.dot_dimension_numbers<[2], [2], [1], [1], [0, 0, 0, 1, 1, 1], [0], [0]>} : vector<4x8x8xf32>, vector<4x32x8xf32>, vector<4x8x32xf32> -> vector<4x8x32xf32>
    "tpu.trace_stop"() : () -> ()
    %cst_49 = arith.constant dense<0.000000e+00> : vector<8x32xf32>
    %57 = vector.multi_reduction <add>, %56, %cst_49 [0] : vector<4x8x32xf32> to vector<8x32xf32>
    %58 = vector.broadcast %20 : vector<1x32xf32> to vector<8x32xf32>
    %59 = arith.addf %57, %58 : vector<8x32xf32>
    %60 = arith.addf %1, %59 : vector<8x32xf32>
    %cst_50 = arith.constant dense<0.000000e+00> : vector<8xf32>
    %61 = vector.multi_reduction <add>, %60, %cst_50 [1] : vector<8x32xf32> to vector<8xf32>
    %62 = vector.shape_cast %61 : vector<8xf32> to vector<8x1xf32>
    %cst_51 = arith.constant 3.200000e+01 : f32
    %63 = vector.broadcast %cst_51 : f32 to vector<8x1xf32>
    %64 = arith.divf %62, %63 : vector<8x1xf32>
    %65 = vector.broadcast %64 : vector<8x1xf32> to vector<8x32xf32>
    %66 = arith.subf %60, %65 : vector<8x32xf32>
    %67 = arith.mulf %66, %66 : vector<8x32xf32>
    %cst_52 = arith.constant dense<0.000000e+00> : vector<8xf32>
    %68 = vector.multi_reduction <add>, %67, %cst_52 [1] : vector<8x32xf32> to vector<8xf32>
    %69 = vector.shape_cast %68 : vector<8xf32> to vector<8x1xf32>
    %cst_53 = arith.constant 3.200000e+01 : f32
    %70 = vector.broadcast %cst_53 : f32 to vector<8x1xf32>
    %71 = arith.divf %69, %70 : vector<8x1xf32>
    %cst_54 = arith.constant 9.99999974E-6 : f32
    %72 = vector.broadcast %cst_54 : f32 to vector<8x1xf32>
    %73 = arith.addf %71, %72 : vector<8x1xf32>
    %74 = math.rsqrt %73 : vector<8x1xf32>
    %75 = vector.broadcast %64 : vector<8x1xf32> to vector<8x32xf32>
    %76 = arith.subf %60, %75 : vector<8x32xf32>
    %77 = vector.broadcast %74 : vector<8x1xf32> to vector<8x32xf32>
    %78 = arith.mulf %76, %77 : vector<8x32xf32>
    %79 = vector.broadcast %21 : vector<1x32xf32> to vector<8x32xf32>
    %80 = arith.mulf %78, %79 : vector<8x32xf32>
    %81 = vector.broadcast %22 : vector<1x32xf32> to vector<8x32xf32>
    %82 = arith.addf %80, %81 : vector<8x32xf32>
    %cst_55 = arith.constant dense<0.000000e+00> : vector<8x64xf32>
    %83 = tpu.matmul %82, %11, %cst_55 {dimension_numbers = #tpu.dot_dimension_numbers<[1], [0], [0], [1], [0, 0, 1, 1], [], []>} : vector<8x32xf32>, vector<32x64xf32>, vector<8x64xf32> -> vector<8x64xf32>
    %84 = vector.broadcast %23 : vector<1x64xf32> to vector<8x64xf32>
    %85 = arith.addf %83, %84 : vector<8x64xf32>
    %cst_56 = arith.constant 0.000000e+00 : f32
    %86 = vector.broadcast %cst_56 : f32 to vector<8x64xf32>
    %87 = arith.maximumf %85, %86 : vector<8x64xf32>
    "tpu.trace_start"() <{level = 10 : i32, message = "sh,dh->sd"}> : () -> ()
    %cst_57 = arith.constant dense<0.000000e+00> : vector<8x32xf32>
    %88 = tpu.matmul %87, %13, %cst_57 {dimension_numbers = #tpu.dot_dimension_numbers<[1], [1], [0], [0], [0, 0, 1, 0], [], []>} : vector<8x64xf32>, vector<32x64xf32>, vector<8x32xf32> -> vector<8x32xf32>
    "tpu.trace_stop"() : () -> ()
    %89 = vector.broadcast %24 : vector<1x32xf32> to vector<8x32xf32>
    %90 = arith.addf %88, %89 : vector<8x32xf32>
    %91 = arith.addf %82, %90 : vector<8x32xf32>
    %cst_58 = arith.constant dense<0.000000e+00> : vector<8xf32>
    %92 = vector.multi_reduction <add>, %91, %cst_58 [1] : vector<8x32xf32> to vector<8xf32>
    %93 = vector.shape_cast %92 : vector<8xf32> to vector<8x1xf32>
    %cst_59 = arith.constant 3.200000e+01 : f32
    %94 = vector.broadcast %cst_59 : f32 to vector<8x1xf32>
    %95 = arith.divf %93, %94 : vector<8x1xf32>
    %96 = vector.broadcast %95 : vector<8x1xf32> to vector<8x32xf32>
    %97 = arith.subf %91, %96 : vector<8x32xf32>
    %98 = arith.mulf %97, %97 : vector<8x32xf32>
    %cst_60 = arith.constant dense<0.000000e+00> : vector<8xf32>
    %99 = vector.multi_reduction <add>, %98, %cst_60 [1] : vector<8x32xf32> to vector<8xf32>
    %100 = vector.shape_cast %99 : vector<8xf32> to vector<8x1xf32>
    %cst_61 = arith.constant 3.200000e+01 : f32
    %101 = vector.broadcast %cst_61 : f32 to vector<8x1xf32>
    %102 = arith.divf %100, %101 : vector<8x1xf32>
    %cst_62 = arith.constant 9.99999974E-6 : f32
    %103 = vector.broadcast %cst_62 : f32 to vector<8x1xf32>
    %104 = arith.addf %102, %103 : vector<8x1xf32>
    %105 = math.rsqrt %104 : vector<8x1xf32>
    %106 = vector.broadcast %95 : vector<8x1xf32> to vector<8x32xf32>
    %107 = arith.subf %91, %106 : vector<8x32xf32>
    %108 = vector.broadcast %105 : vector<8x1xf32> to vector<8x32xf32>
    %109 = arith.mulf %107, %108 : vector<8x32xf32>
    %110 = vector.broadcast %25 : vector<1x32xf32> to vector<8x32xf32>
    %111 = arith.mulf %109, %110 : vector<8x32xf32>
    %112 = vector.broadcast %26 : vector<1x32xf32> to vector<8x32xf32>
    %113 = arith.addf %111, %112 : vector<8x32xf32>
    %c0_63 = arith.constant 0 : index
    %c0_64 = arith.constant 0 : index
    %c0_65 = arith.constant 0 : index
    %114 = vector.load %arg6[%c0_63, %c0_64, %c0_65] : memref<1x8x32xf32, #tpu.memory_space<vmem>>, vector<1x8x32xf32>
    %115 = vector.shape_cast %114 : vector<1x8x32xf32> to vector<8x32xf32>
    %116 = vector.shape_cast %113 : vector<8x32xf32> to vector<1x8x32xf32>
    tpu.vector_store %arg6[%c0_63, %c0_64, %c0_65], %116 {strides = array<i32>} : memref<1x8x32xf32, #tpu.memory_space<vmem>>, vector<1x8x32xf32>,
    return
  }
  func.func @transform_0(%arg0: i32) -> (i32, i32, i32) {
    %c0_i32 = arith.constant 0 : i32
    %c0_i32_0 = arith.constant 0 : i32
    %c0_i32_1 = arith.constant 0 : i32
    return %arg0, %c0_i32, %c0_i32_0 : i32, i32, i32
  }
  func.func @transform_1(%arg0: i32) -> (i32, i32, i32, i32) {
    %c0_i32 = arith.constant 0 : i32
    %c0_i32_0 = arith.constant 0 : i32
    %c0_i32_1 = arith.constant 0 : i32
    %c0_i32_2 = arith.constant 0 : i32
    %c0_i32_3 = arith.constant 0 : i32
    return %c0_i32, %c0_i32_0, %c0_i32_1, %c0_i32_2 : i32, i32, i32, i32
  }
  func.func @transform_2(%arg0: i32) -> (i32, i32, i32) {
    %c0_i32 = arith.constant 0 : i32
    %c0_i32_0 = arith.constant 0 : i32
    %c0_i32_1 = arith.constant 0 : i32
    %c0_i32_2 = arith.constant 0 : i32
    return %c0_i32, %c0_i32_0, %c0_i32_1 : i32, i32, i32
  }
  func.func @transform_3(%arg0: i32) -> (i32, i32, i32) {
    %c0_i32 = arith.constant 0 : i32
    %c0_i32_0 = arith.constant 0 : i32
    %c0_i32_1 = arith.constant 0 : i32
    %c0_i32_2 = arith.constant 0 : i32
    return %c0_i32, %c0_i32_0, %c0_i32_1 : i32, i32, i32
  }
  func.func @transform_4(%arg0: i32) -> (i32, i32) {
    %c0_i32 = arith.constant 0 : i32
    %c0_i32_0 = arith.constant 0 : i32
    %c0_i32_1 = arith.constant 0 : i32
    return %c0_i32, %c0_i32_0 : i32, i32
  }
  func.func @transform_5(%arg0: i32) -> (i32, i32, i32) {
    %c0_i32 = arith.constant 0 : i32
    %c0_i32_0 = arith.constant 0 : i32
    %c0_i32_1 = arith.constant 0 : i32
    return %arg0, %c0_i32, %c0_i32_0 : i32, i32, i32
  }
}

</mosaic_0001>

<bundles_post_ra>
// kernel: tpu_custom_call.1
= control target key start
LH: loop header
LB: loop body
LE: loop exit
PB: predicated region body
PF: predicated region fallthrough
CT: control target
= control target key end

     0   :  { %10 = vsyncpa [#allocation3], 0  ;;  %s3880_s0 = inlined_call_operand.vmem [shape: f32[2,8,32], index: 0, kind: input, shape index: {}]   ;;  %s3881_s1 = inlined_call_operand.vmem [shape: f32[4,4,32,8], index: 1, kind: input, shape index: {}]   ;;  %s3882_s2 = inlined_call_operand.vmem [shape: f32[2,32,64], index: 2, kind: input, shape index: {}]   ;;  %s3883_s3 = inlined_call_operand.vmem [shape: f32[3,4,8], index: 3, kind: input, shape index: {}]   ;;  %s3884_s4 = inlined_call_operand.vmem [shape: f32[7,64], index: 4, kind: input, shape index: {}]   ;;  %s3885_s5 = inlined_call_operand.hbm [shape: f32[2,8,32], index: 5, kind: output, shape index: {}]  }
   0x1   :  { %12 = vsyncpa [#allocation3 + $0x1], 0  ;;  %s3324_s18 = smov 0   ;;  %s3326_s19 = smov 0  }
   0x2   :  { %s3328_s20 = smov 0   ;;  %s3330_s21 = smov 0  }
   0x3 LB: > { %s3345_s22 = sadd.s32 4294967295, %s3287_s21   ;;  %s2576_s23 = sadd.s32 4294967294, %s3287_s21   ;;  %s3287_s21 = sphi %s3330_s21, %s3893_s21   ;;  %s3283_s20 = sphi %s3328_s20, %s3892_s20   ;;  %s3279_s19 = sphi %s3326_s19, %s3891_s19   ;;  %s3275_s18 = sphi %s3324_s18, %s3890_s18  }
   0x4   : > { %s3349_s24 = sadd.s32 1, %s3287_s21   ;;  %s135_s25 = sadd.s32 1, %s3283_s20 }
   0x5   : > { %s132_s26 = ssub.s32 %s3287_s21, %s3349_s24  ;;  %p145_p0 = scmp.ne.s32.totalorder %s3283_s20, %s3279_s19 }
   0x6   : > { %p133_p1 = scmp.eq.s32.totalorder %s132_s26, 0  ;;  %p146_p2 = scmp.eq.s32.totalorder %s3345_s22, 1 }
   0x7   : > { %p151_p3 = scmp.ne.s32.totalorder %s3279_s19, %s3275_s18  ;;  %p152_p4 = scmp.eq.s32.totalorder %s2576_s23, 1 }
   0x8   : > { %s3360_s27 = scalar_select %p133_p1, %s3283_s20, %s135_s25  }
   0x9   : > { %p3362_p5 = por %p146_p2, %p145_p0  ;;  %p3366_p6 = por %p152_p4, %p151_p3 }
   0xa   : > { %p2579_p7 = scmp.ge.s32.totalorder %s3287_s21, 1  ;;  %p189_p8 = scmp.lt.s32.totalorder %s3287_s21, 3 }
   0xc   : > { %p190_p9 = pnand %p2579_p7, %p189_p8 }
   0xd   : > { %v221_v0 = vld [vmem:[%s3881_s1] sm:$0xff] (!%p190_p9)  ;;  %v222_v1 = vld [vmem:[%s3881_s1 + $0x8] sm:$0xff] (!%p190_p9)  ;;  %v3289_v3 = vmov (!%p190_p9), 0.0|0.0   ;;  %v223_v6 = vld [vmem:[%s3881_s1 + $0x10] sm:$0xff] (!%p190_p9)  ;;  %p216_p10 = scmp.lt.s32.totalorder (!%p190_p9), %s3345_s22, 1  ;;  %vm3290_vm0 = vmmov (!%p190_p9), 0  }
   0xe   : > { %193 = sbr.rel (%p190_p9) target bundleno = 2310 (0x906), region = 40  ;;  %v225_v2 = vld [vmem:[%s3881_s1 + $0x20] sm:$0xff] (!%p190_p9)  ;;  %3044 = vmatprep.subr.bf16.mxu0 (!%p190_p9), %v3289_v3  ;;  %3050 = vmatprep.subr.bf16.mxu1 (!%p190_p9), %v3289_v3  ;;  %v3045_v4 = vpack.c.bf16 (!%p190_p9), %v222_v1, %v221_v0  ;;  %v226_v5 = vld [vmem:[%s3881_s1 + $0x28] sm:$0xff] (!%p190_p9)  ;;  %v224_v7 = vld [vmem:[%s3881_s1 + $0x18] sm:$0xff] (!%p190_p9)  ;;  %v3291_v11 = vmov (!%p190_p9), 0.0   ;;  %vm354_vm1 = vcmask (!%p190_p9), 261120  }
   0xf   : > { %v3051_v8 = vpack.c.bf16 (!%p190_p9), %v226_v5, %v225_v2  ;;  %v227_v9 = vld [vmem:[%s3881_s1 + $0x30] sm:$0xff] (!%p190_p9)  ;;  %v228_v10 = vld [vmem:[%s3881_s1 + $0x38] sm:$0xff] (!%p190_p9)  ;;  %2814 = vmatprep.mubr.msk.f32.mxu0 (!%p190_p9), %vm3290_vm0, %v3291_v11  ;;  %2825 = vmatprep.mubr.msk.f32.mxu1 (!%p190_p9), %vm3290_vm0, %v3291_v11  ;;  %v3048_v12 = vpack.c.bf16 (!%p190_p9), %v224_v7, %v223_v6  ;;  %v229_v14 = vld [vmem:[%s3881_s1 + $0x40] sm:$0xff] (!%p190_p9)  ;;  %vm1288_vm2 = vcmask (!%p190_p9), 64512   ;;  %vm2392_vm4 = vcmask (!%p190_p9), 523264   ;;  %s2697_s16 = sshll.u32 (!%p190_p9), %s3345_s22, 7 }
  0x10   : > { %3046 = vmatpush3.bf16.msra.mxu0 (!%p190_p9), %v3045_v4  ;;  %v3054_v13 = vpack.c.bf16 (!%p190_p9), %v228_v10, %v227_v9  ;;  %v230_v15 = vld [vmem:[%s3881_s1 + $0x48] sm:$0xff] (!%p190_p9)  ;;  %v233_v16 = vld [vmem:[%s3881_s1 + $0x60] sm:$0xff] (!%p190_p9)  ;;  %v231_v21 = vld [vmem:[%s3881_s1 + $0x50] sm:$0xff] (!%p190_p9) }
  0x11   : > { %3052 = vmatpush3.bf16.msra.mxu1 (!%p190_p9), %v3051_v8  ;;  %3047 = vmatprep.subr.bf16.mxu0 (!%p190_p9), %v3289_v3  ;;  %v234_v17 = vld [vmem:[%s3881_s1 + $0x68] sm:$0xff] (!%p190_p9)  ;;  %v3057_v19 = vpack.c.bf16 (!%p190_p9), %v230_v15, %v229_v14  ;;  %v232_v22 = vld [vmem:[%s3881_s1 + $0x58] sm:$0xff] (!%p190_p9)  ;;  %v235_v23 = vld [vmem:[%s3881_s1 + $0x70] sm:$0xff] (!%p190_p9)  ;;  %v321_v15 = vlaneseq (!%p190_p9) }
  0x12   : > { %3053 = vmatprep.subr.bf16.mxu1 (!%p190_p9), %v3289_v3  ;;  %v3063_v20 = vpack.c.bf16 (!%p190_p9), %v234_v17, %v233_v16  ;;  %v236_v24 = vld [vmem:[%s3881_s1 + $0x78] sm:$0xff] (!%p190_p9)  ;;  %v3060_v25 = vpack.c.bf16 (!%p190_p9), %v232_v22, %v231_v21  ;;  %v2582_v27 = vld [vmem:[%s3881_s1 + $0x80] sm:$0xff] (!%p190_p9)  ;;  %v2583_v28 = vld [vmem:[%s3881_s1 + $0x88] sm:$0xff] (!%p190_p9) }
  0x13   : > { %v3066_v26 = vpack.c.bf16 (!%p190_p9), %v236_v24, %v235_v23  ;;  %v2586_v29 = vld [vmem:[%s3881_s1 + $0xa0] sm:$0xff] (!%p190_p9)  ;;  %v2587_v30 = vld [vmem:[%s3881_s1 + $0xa8] sm:$0xff] (!%p190_p9)  ;;  %v3069_v31 = vpack.c.bf16 (!%p190_p9), %v2583_v28, %v2582_v27  ;;  %v2584_v33 = vld [vmem:[%s3881_s1 + $0x90] sm:$0xff] (!%p190_p9)  ;;  %v322_v22 = vshrl.u32 (!%p190_p9), %v321_v15, 7 }
  0x14   : > { %3049 = vmatpush3.bf16.msra.mxu0 (!%p190_p9), %v3048_v12  ;;  %v3075_v32 = vpack.c.bf16 (!%p190_p9), %v2587_v30, %v2586_v29  ;;  %v2585_v34 = vld [vmem:[%s3881_s1 + $0x98] sm:$0xff] (!%p190_p9)  ;;  %v2588_v35 = vld [vmem:[%s3881_s1 + $0xb0] sm:$0xff] (!%p190_p9)  ;;  %v2590_v39 = vld [vmem:[%s3881_s1 + $0xc0] sm:$0xff] (!%p190_p9) }
  0x15   : > { %s217_s30 = scalar_select %p216_p10, %s3345_s22, 1  ;;  %3055 = vmatpush3.bf16.msra.mxu1 %v3054_v13  ;;  %3056 = vmatprep.subr.bf16.mxu0 %v3289_v3  ;;  %v2589_v36 = vld [vmem:[%s3881_s1 + $0xb8] sm:$0xff]  ;;  %v3072_v37 = vpack.c.bf16 %v2585_v34, %v2584_v33  ;;  %v2591_v40 = vld [vmem:[%s3881_s1 + $0xc8] sm:$0xff]  ;;  %v2594_v41 = vld [vmem:[%s3881_s1 + $0xe0] sm:$0xff]  ;;  %v3292_v13 = vmov 1966171168  }
  0x16   : > { %3062 = vmatprep.subr.bf16.mxu1 %v3289_v3  ;;  %v3078_v38 = vpack.c.bf16 %v2589_v36, %v2588_v35  ;;  %v2595_v42 = vld [vmem:[%s3881_s1 + $0xe8] sm:$0xff]  ;;  %v3081_v43 = vpack.c.bf16 %v2591_v40, %v2590_v39  ;;  %v2592_v45 = vld [vmem:[%s3881_s1 + $0xd0] sm:$0xff]  ;;  %v2593_v46 = vld [vmem:[%s3881_s1 + $0xd8] sm:$0xff]  ;;  %v319_v14 = vunpack.c.l.s4 %v3292_v13  ;;  %s3293_s22 = smov [#allocation2]  }
  0x17   : > { %s2581_s10 = sshll.u32 %s217_s30, 3  ;;  %v3087_v44 = vpack.c.bf16 %v2595_v42, %v2594_v41  ;;  %v2596_v47 = vld [vmem:[%s3881_s1 + $0xf0] sm:$0xff]  ;;  %v2597_v48 = vld [vmem:[%s3881_s1 + $0xf8] sm:$0xff]  ;;  %v3084_v49 = vpack.c.bf16 %v2593_v46, %v2592_v45  ;;  %v2598_v51 = vld [vmem:[%s3881_s1 + $0x100] sm:$0xff]  ;;  %s3837_s30 = scalar_lea.hbm %s3885_s5, %s2697_s16 }
  0x18   : > { %s219_s17 = scalar_lea.vmem %s3880_s0, %s2581_s10  ;;  %v3090_v50 = vpack.c.bf16 %v2597_v48, %v2596_v47  ;;  %v2599_v52 = vld [vmem:[%s3881_s1 + $0x108] sm:$0xff]  ;;  %v2600_v54 = vld [vmem:[%s3881_s1 + $0x110] sm:$0xff]  ;;  %v2601_v55 = vld [vmem:[%s3881_s1 + $0x118] sm:$0xff]  ;;  %v320_v21 = vunpack.c.0.s8 %v319_v14  ;;  %s213_s10 = sand.u32 1, %s3279_s19  }
  0x19   : > { %v3421_v18 = vld [vmem:[%s219_s17] sm:$0xff]  ;;  %v3093_v53 = vpack.c.bf16 %v2599_v52, %v2598_v51  ;;  %v3096_v56 = vpack.c.bf16 %v2601_v55, %v2600_v54  ;;  %v2603_v58 = vld [vmem:[%s3881_s1 + $0x128] sm:$0xff]  ;;  %v2604_v63 = vld [vmem:[%s3881_s1 + $0x130] sm:$0xff]  ;;  %s2580_s11 = sshll.u32 %s213_s10, 3  ;;  %s2504_s6 = scalar_lea.sflag [#allocation3], %s213_s10 }
  0x1a   : > { %2815 = vmatmul.mubr.msk.f32.vlgmr.msra.gmra.mrb[0].mxu0 %vm354_vm1, %v3421_v18  ;;  %2826 = vmatmul.mubr.msk.f32.vlgmr.msra.gmra.mrb[0].mxu1 %vm354_vm1, %v3421_v18  ;;  %v2602_v57 = vld [vmem:[%s3881_s1 + $0x120] sm:$0xff]  ;;  %v2607_v61 = vld [vmem:[%s3881_s1 + $0x148] sm:$0xff]  ;;  %v2605_v0 = vld [vmem:[%s3881_s1 + $0x138] sm:$0xff]  ;;  %v3604_v24 = vsub.s32 %v320_v21, %v322_v22  ;;  %s215_s17 = scalar_lea.vmem [#allocation2], %s2580_s11  ;;  %s3229_s8 = sshll.u32 %s3293_s22, 4  ;;  %s3230_s8 = int_to_ptr.vmem [resolvable:$false] %s3229_s8 }
  0x1b   : > { %3058 = vmatpush3.bf16.msra.mxu0 %v3057_v19  ;;  %3064 = vmatpush3.bf16.msra.mxu1 %v3063_v20  ;;  %v2606_v59 = vld [vmem:[%s3881_s1 + $0x140] sm:$0xff]  ;;  %v3099_v60 = vpack.c.bf16 %v2603_v58, %v2602_v57  ;;  %v2608_v1 = vld [vmem:[%s3881_s1 + $0x150] sm:$0xff]  ;;  %v3102_v2 = vpack.c.bf16 %v2605_v0, %v2604_v63  ;;  %v2609_v4 = vld [vmem:[%s3881_s1 + $0x158] sm:$0xff]  ;;  %s2517_s23 = sshll.u32 %s215_s17, 4  ;;  %s3231_s9 = scalar_lea.vmem %s3230_s8, 256  ;;  %s3839_s23 = int_to_ptr.vmem [resolvable:$true] %s2517_s23 }
  0x1c   : > { %3059 = vmatprep.subr.bf16.mxu0 %v3289_v3  ;;  %3065 = vmatprep.subr.bf16.mxu1 %v3289_v3  ;;  %v3105_v62 = vpack.c.bf16 %v2607_v61, %v2606_v59  ;;  %v3108_v5 = vpack.c.bf16 %v2609_v4, %v2608_v1  ;;  %v2610_v6 = vld [vmem:[%s3881_s1 + $0x160] sm:$0xff]  ;;  %v2611_v7 = vld [vmem:[%s3881_s1 + $0x168] sm:$0xff]  ;;  %v2612_v9 = vld [vmem:[%s3881_s1 + $0x170] sm:$0xff]  ;;  %s3225_s7 = scalar_lea.vmem %s3839_s23, 128  ;;  %p3232_p0 = scmp.lt.s32.totalorder %s3839_s23, %s3230_s8 }
  0x1d   : > { %2836 = vmatprep.mubr.msk.f32.mxu0 %vm3290_vm0, %v3291_v11  ;;  %2847 = vmatprep.mubr.msk.f32.mxu1 %vm3290_vm0, %v3291_v11  ;;  %v3111_v8 = vpack.c.bf16 %v2611_v7, %v2610_v6  ;;  %v2613_v10 = vld [vmem:[%s3881_s1 + $0x178] sm:$0xff]  ;;  %v2641_v23 = vld.sshfl [vmem:[%s3883_s3 + $0x4] sm:$0x33 pattern:$0x75316420]  ;;  %vm3683_vm3 = vmpackc.low %vm1288_vm2, %vm1288_vm2  ;;  %p3226_p11 = scmp.ne.s32.totalorder %s3839_s23, %s3225_s7  ;;  %p3233_p1 = scmp.lt.s32.totalorder %s3231_s9, %s3225_s7 }
  0x1e   : > { %v3114_v12 = vpack.c.bf16 %v2613_v10, %v2612_v9  ;;  %v2636_v27 = vld.sshfl [vmem:[%s3883_s3] sm:$0x33 pattern:$0x75316420]  ;;  %v653_v30 = vrot.slane %v2641_v23, %v3604_v24  ;;  %vm3156_vm5 = vmpackc.low %vm2392_vm4, %vm2392_vm4 }
  0x1f   : > { %3061 = vmatpush3.bf16.msra.mxu0 %v3060_v25  ;;  %3067 = vmatpush3.bf16.msra.mxu1 %v3066_v26  ;;  %v646_v25 = vcombine.high %v2641_v23, %v2641_v23  ;;  %v324_v34 = vrot.slane %v2636_v27, %v3604_v24  ;;  %v317_v35 = vcombine.high %v2636_v27, %v2636_v27  ;;  %v2646_v1 = vld.sshfl [vmem:[%s3883_s3 + $0x8] sm:$0x33 pattern:$0x75316420]  ;;  %p3227_p12 = pnand %p3226_p11, %p3362_p5  ;;  %p3234_p2 = por %p3233_p1, %p3232_p0 }
  0x20   : > { %3068 = vmatprep.subr.bf16.mxu0 %v3289_v3  ;;  %3074 = vmatprep.subr.bf16.mxu1 %v3289_v3  ;;  %v971_v14 = vcombine.high %v2646_v1, %v2646_v1 }
  0x21   : > { %v660_v33 = vrot.slane %v646_v25, %v3604_v24  ;;  %v331_v39 = vrot.slane %v317_v35, %v3604_v24  ;;  %p3228_p13 = pneg %p3227_p12 }
  0x22   : > { %2837 = vmatmul.mubr.msk.f32.vlgmr.msra.gmra.mrb[2].mxu0 %vm354_vm1, %v3421_v18  ;;  %2848 = vmatmul.mubr.msk.f32.vlgmr.msra.gmra.mrb[2].mxu1 %vm354_vm1, %v3421_v18  ;;  %v985_v15 = vrot.slane %v971_v14, %v3604_v24  ;;  %v2618_v14 = vld [vmem:[%s3881_s1 + $0x1a0] sm:$0xff] }
  0x23   : > { %3070 = vmatpush3.bf16.msra.mxu0 %v3069_v31  ;;  %3076 = vmatpush3.bf16.msra.mxu1 %v3075_v32  ;;  %v3610_v32 = vsub.s32 0, %v322_v22  ;;  %v662_v46 = vcombine.high %v660_v33, %v660_v33  ;;  %v333_v51 = vcombine.high %v331_v39, %v331_v39  ;;  %p3235_p3 = pnand %p3234_p2, %p3228_p13 }
  0x24   : > { %3071 = vmatprep.subr.bf16.mxu0 %v3289_v3  ;;  %3077 = vmatprep.subr.bf16.mxu1 %v3289_v3  ;;  %v987_v21 = vcombine.high %v985_v15, %v985_v15 }
  0x25   : > { %2858 = vmatprep.mubr.msk.f32.mxu0 %vm3290_vm0, %v3291_v11  ;;  %2869 = vmatprep.mubr.msk.f32.mxu1 %vm3290_vm0, %v3291_v11  ;;  %v666_v36 = vrot.slane %v653_v30, %v3610_v32  ;;  %v349_v57 = vrot.slane %v333_v51, %v3610_v32 }
  0x26   : > { %v1003_v25 = vrot.slane %v987_v21, %v3610_v32  ;;  %v2617_v21 = vld [vmem:[%s3881_s1 + $0x198] sm:$0xff] }
  0x27   : > { %3073 = vmatpush3.bf16.msra.mxu0 %v3072_v37  ;;  %3079 = vmatpush3.bf16.msra.mxu1 %v3078_v38  ;;  %v670_v37 = vrot.slane %v660_v33, %v3610_v32  ;;  %v337_v38 = vrot.slane %v324_v34, %v3610_v32 }
  0x28   : > { %3080 = vmatprep.subr.bf16.mxu0 %v3289_v3  ;;  %3086 = vmatprep.subr.bf16.mxu1 %v3289_v3 }
  0x2a   : > { %2859 = vmatmul.mubr.msk.f32.vlgmr.msra.gmra.mrb[4].mxu0 %vm354_vm1, %v3421_v18  ;;  %2870 = vmatmul.mubr.msk.f32.vlgmr.msra.gmra.mrb[4].mxu1 %vm354_vm1, %v3421_v18 }
  0x2b   : > { %3082 = vmatpush3.bf16.msra.mxu0 %v3081_v43  ;;  %3088 = vmatpush3.bf16.msra.mxu1 %v3087_v44  ;;  %v661_v44 = vcombine.high %v653_v30, %v653_v30 }
  0x2c   : > { %3083 = vmatprep.subr.bf16.mxu0 %v3289_v3  ;;  %3089 = vmatprep.subr.bf16.mxu1 %v3289_v3 }
  0x2d   : > { %2880 = vmatprep.mubr.msk.f32.mxu0 %vm3290_vm0, %v3291_v11  ;;  %2891 = vmatprep.mubr.msk.f32.mxu1 %vm3290_vm0, %v3291_v11  ;;  %v674_v52 = vrot.slane %v661_v44, %v3610_v32 }
  0x2f   : > { %3085 = vmatpush3.bf16.msra.mxu0 %v3084_v49  ;;  %3091 = vmatpush3.bf16.msra.mxu1 %v3090_v50  ;;  %v341_v49 = vrot.slane %v331_v39, %v3610_v32  ;;  %v332_v50 = vcombine.high %v324_v34, %v324_v34 }
  0x30   : > { %3092 = vmatprep.subr.bf16.mxu0 %v3289_v3  ;;  %3098 = vmatprep.subr.bf16.mxu1 %v3289_v3 }
  0x31   : > { %v345_v55 = vrot.slane %v332_v50, %v3610_v32 }
  0x32   : > { %2881 = vmatmul.mubr.msk.f32.vlgmr.msra.gmra.mrb[6].mxu0 %vm354_vm1, %v3421_v18  ;;  %2892 = vmatmul.mubr.msk.f32.vlgmr.msra.gmra.mrb[6].mxu1 %vm354_vm1, %v3421_v18 }
  0x33   : > { %3094 = vmatpush3.bf16.msra.mxu0 %v3093_v53  ;;  %2902 = vmatprep.mubr.msk.f32.mxu0 %vm3290_vm0, %v3291_v11  ;;  %v678_v53 = vrot.slane %v662_v46, %v3610_v32 }
  0x34   : > { %3095 = vmatprep.subr.bf16.mxu0 %v3289_v3  ;;  %2913 = vmatprep.mubr.msk.f32.mxu1 %vm3290_vm0, %v3291_v11 }
  0x35   : > { %3100 = vmatpush3.bf16.msra.mxu1 %v3099_v60 }
  0x36   : > { %3101 = vmatprep.subr.bf16.mxu1 %v3289_v3 }
  0x37   : > { %3097 = vmatpush3.bf16.msra.mxu0 %v3096_v56 }
  0x38   : > { %3104 = vmatprep.subr.bf16.mxu0 %v3289_v3 }
  0x39   : > { %3103 = vmatpush3.bf16.msra.mxu1 %v3102_v2  ;;  %v978_v2 = vrot.slane %v2646_v1, %v3604_v24 }
  0x3a   : > { %2903 = vmatmul.mubr.msk.f32.vlgmr.msra.gmra.mrb[8].mxu0 %vm354_vm1, %v3421_v18  ;;  %3110 = vmatprep.subr.bf16.mxu1 %v3289_v3 }
  0x3b   : > { %3106 = vmatpush3.bf16.msra.mxu0 %v3105_v62  ;;  %2924 = vmatprep.mubr.msk.f32.mxu0 %vm3290_vm0, %v3291_v11  ;;  %v991_v4 = vrot.slane %v978_v2, %v3610_v32 }
  0x3c   : > { %3107 = vmatprep.subr.bf16.mxu0 %v3289_v3  ;;  %2914 = vmatmul.mubr.msk.f32.vlgmr.msra.gmra.mrb[8].mxu1 %vm354_vm1, %v3421_v18 }
  0x3d   : > { %3112 = vmatpush3.bf16.msra.mxu1 %v3111_v8  ;;  %2935 = vmatprep.mubr.msk.f32.mxu1 %vm3290_vm0, %v3291_v11  ;;  %v986_v8 = vcombine.high %v978_v2, %v978_v2 }
  0x3e   : > { %3113 = vmatprep.subr.bf16.mxu1 %v3289_v3 }
  0x3f   : > { %3109 = vmatpush3.bf16.msra.mxu0 %v3108_v5  ;;  %v999_v9 = vrot.slane %v986_v8, %v3610_v32  ;;  %v2615_v8 = vld [vmem:[%s3881_s1 + $0x188] sm:$0xff] }
  0x40   : > { %2938 = vmatprep.subr.mxu0 %v3291_v11 }
  0x41   : > { %3115 = vmatpush3.bf16.msra.mxu1 %v3114_v12 }
  0x42   : > { %2925 = vmatmul.mubr.msk.f32.vlgmr.msra.gmra.mrb[10].mxu0 %vm354_vm1, %v3421_v18  ;;  %2953 = vmatprep.subr.mxu1 %v3291_v11 }
  0x43   : > { %2940 = vmatprep.mubr.msk.f32.mxu0 %vm3290_vm0, %v3291_v11 }
  0x44   : > { %2936 = vmatmul.mubr.msk.f32.vlgmr.msra.gmra.mrb[10].mxu1 %vm354_vm1, %v3421_v18 }
  0x45   : > { %2955 = vmatprep.mubr.msk.f32.mxu1 %vm3290_vm0, %v3291_v11 }
  0xed   : > { %v424_v16 = vpop.f32.mrb[0].mxu0  ;;  %v494_v19 = vpop.f32.mrb[0].mxu1 }
  0xee   : > { %v2816_v17 = vpop.f32.mrb[1].mxu0  ;;  %v2827_v20 = vpop.f32.mrb[1].mxu1  ;;  %v425_v48 = vadd.f32 %v424_v16, %v337_v38  ;;  %v495_v54 = vadd.f32 %v494_v19, %v341_v49  ;;  %v995_v19 = vrot.slane %v985_v15, %v3610_v32  ;;  %v2619_v15 = vld [vmem:[%s3881_s1 + $0x1a8] sm:$0xff] }
  0xf5   : > { %v564_v26 = vpop.f32.mrb[2].mxu0  ;;  %v634_v29 = vpop.f32.mrb[2].mxu1 }
  0xf6   : > { %v2838_v28 = vpop.f32.mrb[3].mxu0  ;;  %v2849_v31 = vpop.f32.mrb[3].mxu1  ;;  %v565_v63 = vadd.f32 %v564_v26, %v345_v55  ;;  %v635_v0 = vadd.f32 %v634_v29, %v349_v57 }
  0xfd   : > { %v749_v40 = vpop.f32.mrb[4].mxu0  ;;  %v819_v43 = vpop.f32.mrb[4].mxu1 }
  0xfe   : > { %v750_v41 = vadd.f32 %v749_v40, %v666_v36  ;;  %v2860_v42 = vpop.f32.mrb[5].mxu0  ;;  %v2871_v45 = vpop.f32.mrb[5].mxu1  ;;  %v820_v47 = vadd.f32 %v819_v43, %v670_v37 }
 0x100   : > { %2939 = vmatpush3.xpose.msk.msra.mxu0 %vm1288_vm2, %v750_v41 }
 0x101   : > { %2943 = vmatprep.subr.mxu0 %v3291_v11 }
 0x103   : > { %2941 = vmatmul.mubr.msk.f32.vlgmr.msra.gmra.mrb[12].mxu0 %vm1288_vm2, %v425_v48 }
 0x104   : > { %2944 = vmatpush3.xpose.msk.msra.mxu0 %vm1288_vm2, %v820_v47  ;;  %2945 = vmatprep.mubr.msk.f32.mxu0 %vm3290_vm0, %v3291_v11 }
 0x105   : > { %v889_v56 = vpop.f32.mrb[6].mxu0  ;;  %2948 = vmatprep.subr.mxu0 %v3291_v11  ;;  %v959_v59 = vpop.f32.mrb[6].mxu1 }
 0x106   : > { %v890_v58 = vadd.f32 %v889_v56, %v674_v52  ;;  %v2882_v60 = vpop.f32.mrb[7].mxu0  ;;  %v960_v61 = vadd.f32 %v959_v59, %v678_v53  ;;  %v2893_v62 = vpop.f32.mrb[7].mxu1 }
 0x107   : > { %2946 = vmatmul.mubr.msk.f32.vlgmr.msra.gmra.mrb[14].mxu0 %vm1288_vm2, %v495_v54 }
 0x108   : > { %2949 = vmatpush3.xpose.msk.msra.mxu0 %vm1288_vm2, %v890_v58  ;;  %2950 = vmatprep.mubr.msk.f32.mxu0 %vm3290_vm0, %v3291_v11 }
 0x109   : > { %2954 = vmatpush3.xpose.msk.msra.mxu1 %vm1288_vm2, %v960_v61  ;;  %2958 = vmatprep.subr.mxu0 %v3291_v11 }
 0x10a   : > { %2963 = vmatprep.subr.mxu1 %v3291_v11 }
 0x10b   : > { %2951 = vmatmul.mubr.msk.f32.vlgmr.msra.gmra.mrb[16].mxu0 %vm1288_vm2, %v565_v63 }
 0x10c   : > { %2956 = vmatmul.mubr.msk.f32.vlgmr.msra.gmra.mrb[12].mxu1 %vm1288_vm2, %v635_v0  ;;  %2960 = vmatprep.mubr.msk.f32.mxu0 %vm3290_vm0, %v3291_v11 }
 0x10d   : > { %2965 = vmatprep.mubr.msk.f32.mxu1 %vm3290_vm0, %v3291_v11  ;;  %v1074_v5 = vpop.f32.mrb[8].mxu0 }
 0x10e   : > { %v1075_v6 = vadd.f32 %v1074_v5, %v991_v4  ;;  %v2904_v7 = vpop.f32.mrb[9].mxu0 }
 0x10f   : > { %v1144_v16 = vpop.f32.mrb[8].mxu1  ;;  %v2614_v7 = vld [vmem:[%s3881_s1 + $0x180] sm:$0xff] }
 0x110   : > { %2959 = vmatpush3.msra.mxu0 %v1075_v6  ;;  %v2915_v17 = vpop.f32.mrb[9].mxu1  ;;  %v1145_v20 = vadd.f32 %v1144_v16, %v995_v19 }
 0x111   : > { %2968 = vmatprep.subr.mxu0 %v3291_v11  ;;  %v3125_v17 = vpack.c.bf16 %v2619_v15, %v2618_v14  ;;  %v2632_v15 = vld [vmem:[%s3882_s2 + $0x30] sm:$0xff] }
 0x112   : > { %2964 = vmatpush3.msra.mxu1 %v1145_v20  ;;  %v2616_v20 = vld [vmem:[%s3881_s1 + $0x190] sm:$0xff] }
 0x113   : > { %2973 = vmatprep.subr.mxu1 %v3291_v11 }
 0x115   : > { %v1214_v10 = vpop.f32.mrb[10].mxu0 }
 0x116   : > { %v3650_v12 = vadd.f32 %v1214_v10, %v999_v9  ;;  %v2926_v13 = vpop.f32.mrb[11].mxu0  ;;  %v3117_v10 = vpack.c.bf16 %v2615_v8, %v2614_v7  ;;  %v289_v7 = vld [vmem:[%s3882_s2 + $0x8] sm:$0xff] }
 0x117   : > { %v1284_v22 = vpop.f32.mrb[10].mxu1  ;;  %v2631_v13 = vld [vmem:[%s3882_s2 + $0x28] sm:$0xff] }
 0x118   : > { %v2937_v23 = vpop.f32.mrb[11].mxu1  ;;  %v3656_v26 = vadd.f32 %v1284_v22, %v1003_v25  ;;  %v3121_v22 = vpack.c.bf16 %v2617_v21, %v2616_v20  ;;  %v2621_v25 = vld [vmem:[%s3881_s1 + $0x1b8] sm:$0xff] }
 0x119   : > { %v2620_v23 = vld [vmem:[%s3881_s1 + $0x1b0] sm:$0xff] }
 0x1d6   : > { %v1361_v27 = vpop.f32.mrb[12].mxu0 }
 0x1d7   : > { %v1593_v28 = vmul.f32 0.35355338, %v1361_v27  ;;  %v2942_v29 = vpop.f32.mrb[13].mxu0  ;;  %v2622_v27 = vld [vmem:[%s3881_s1 + $0x1c0] sm:$0xff] }
 0x1d9   : > { %v1597_v24 = vsel %vm1288_vm2, %v1593_v28, -inf }
 0x1da   : > { %1598 = vmax.xlane.f32.xlu0 %v1597_v24  ;;  %v1437_v30 = vpop.f32.mrb[14].mxu0  ;;  %v2626_v24 = vld [vmem:[%s3881_s1 + $0x1e0] sm:$0xff] }
 0x1db   : > { %v1594_v31 = vmul.f32 0.35355338, %v1437_v30  ;;  %v2947_v33 = vpop.f32.mrb[15].mxu0  ;;  %v2627_v30 = vld [vmem:[%s3881_s1 + $0x1e8] sm:$0xff] }
 0x1dd   : > { %v1600_v34 = vsel %vm1288_vm2, %v1594_v31, -inf }
 0x1de   : > { %1601 = vmax.xlane.f32.xlu0 %v1600_v34  ;;  %v1513_v35 = vpop.f32.mrb[16].mxu0  ;;  %v3141_v34 = vpack.c.bf16 %v2627_v30, %v2626_v24 }
 0x1df   : > { %v1589_v36 = vpop.f32.mrb[12].mxu1  ;;  %v1595_v32 = vmul.f32 0.35355338, %v1513_v35  ;;  %v2952_v37 = vpop.f32.mrb[17].mxu0  ;;  %v2624_v35 = vld [vmem:[%s3881_s1 + $0x1d0] sm:$0xff] }
 0x1e0   : > { %v2957_v38 = vpop.f32.mrb[13].mxu1  ;;  %v1596_v39 = vmul.f32 0.35355338, %v1589_v36  ;;  %v2625_v36 = vld [vmem:[%s3881_s1 + $0x1d8] sm:$0xff] }
 0x1e1   : > { %v1603_v40 = vsel %vm1288_vm2, %v1595_v32, -inf  ;;  %v3137_v38 = vpack.c.bf16 %v2625_v36, %v2624_v35 }
 0x1e2   : > { %1604 = vmax.xlane.f32.xlu1 %v1603_v40  ;;  %v1606_v41 = vsel %vm1288_vm2, %v1596_v39, -inf  ;;  %v2629_v40 = vld [vmem:[%s3881_s1 + $0x1f8] sm:$0xff] }
 0x1e6   : > { %1607 = vmax.xlane.f32.xlu1 %v1606_v41 }
 0x267   : > { %v1599_v42 = vpop.xlane.xlu0 %1598 }
 0x268   : > { %v1609_v43 = vsub.f32 %v1593_v28, %v1599_v42  ;;  %v2623_v28 = vld [vmem:[%s3881_s1 + $0x1c8] sm:$0xff] }
 0x269   : > { %v3133_v29 = vpack.c.bf16 %v2623_v28, %v2622_v27  ;;  %v2686_v28 = vld [vmem:[%s3884_s4 + $0x3] ss:$0 sm:$0xff] }
 0x26a   : > { %v1613_v44 = vmul.f32 1.442695, %v1609_v43 }
 0x26b   : > { %v1602_v45 = vpop.xlane.xlu0 %1601 }
 0x26c   : > { %3205 = vpow2.f32 %v1613_v44  ;;  %v1610_v46 = vsub.f32 %v1594_v31, %v1602_v45 }
 0x26e   : > { %v1615_v47 = vmul.f32 1.442695, %v1610_v46 }
 0x26f   : > { %v1605_v48 = vpop.xlane.xlu1 %1604 }
 0x270   : > { %3207 = vpow2.f32 %v1615_v47  ;;  %v1611_v49 = vsub.f32 %v1595_v32, %v1605_v48 }
 0x272   : > { %v1617_v50 = vmul.f32 1.442695, %v1611_v49 }
 0x273   : > { %v1608_v51 = vpop.xlane.xlu1 %1607 }
 0x274   : > { %3209 = vpow2.f32 %v1617_v50  ;;  %v1612_v52 = vsub.f32 %v1596_v39, %v1608_v51  ;;  %v2628_v39 = vld [vmem:[%s3881_s1 + $0x1f0] sm:$0xff] }
 0x275   : > { %v3145_v43 = vpack.c.bf16 %v2629_v40, %v2628_v39 }
 0x276   : > { %v3206_v53 = vpop.eup %3205  ;;  %v1619_v54 = vmul.f32 1.442695, %v1612_v52 }
 0x277   : > { %v1621_v55 = vsel %vm1288_vm2, %v3206_v53, 0.0 }
 0x278   : > { %3211 = vpow2.f32 %v1619_v54  ;;  %1622 = vadd.xlane.f32.xlu0 %v1621_v55 }
 0x27a   : > { %v3208_v56 = vpop.eup %3207 }
 0x27b   : > { %v1624_v57 = vsel %vm1288_vm2, %v3208_v56, 0.0 }
 0x27c   : > { %1625 = vadd.xlane.f32.xlu1 %v1624_v57 }
 0x27e   : > { %v3210_v58 = vpop.eup %3209 }
 0x27f   : > { %v1627_v59 = vsel %vm1288_vm2, %v3210_v58, 0.0 }
 0x280   : > { %1628 = vadd.xlane.f32.xlu0 %v1627_v59 }
 0x282   : > { %v3212_v60 = vpop.eup %3211 }
 0x283   : > { %v1630_v61 = vsel %vm1288_vm2, %v3212_v60, 0.0 }
 0x284   : > { %1631 = vadd.xlane.f32.xlu1 %v1630_v61 }
 0x305   : > { %v1623_v62 = vpop.xlane.xlu0 %1622 }
 0x306   : > { %3213 = vrcp.f32 %v1623_v62 }
 0x309   : > { %v1626_v63 = vpop.xlane.xlu1 %1625 }
 0x30a   : > { %3215 = vrcp.f32 %v1626_v63 }
 0x30d   : > { %v1629_v0 = vpop.xlane.xlu0 %1628 }
 0x30e   : > { %3217 = vrcp.f32 %v1629_v0 }
 0x310   : > { %v3214_v1 = vpop.eup %3213 }
 0x311   : > { %v1637_v2 = vmul.f32 %v3214_v1, %v3206_v53  ;;  %v1632_v4 = vpop.xlane.xlu1 %1631 }
 0x312   : > { %3219 = vrcp.f32 %v1632_v4 }
 0x313   : > { %2961 = vmatmul.mubr.msk.f32.vlgmr.msra.gmra.mrb[18].mxu0 %vm1288_vm2, %v1637_v2 }
 0x314   : > { %v3216_v5 = vpop.eup %3215  ;;  %2969 = vmatpush3.msra.mxu0 %v3650_v12  ;;  %2970 = vmatprep.mubr.msk.f32.mxu0 %vm3290_vm0, %v3291_v11 }
 0x315   : > { %v1638_v6 = vmul.f32 %v3216_v5, %v3208_v56  ;;  %3116 = vmatprep.subr.bf16.mxu0 %v3289_v3 }
 0x317   : > { %2966 = vmatmul.mubr.msk.f32.vlgmr.msra.gmra.mrb[14].mxu1 %vm1288_vm2, %v1638_v6  ;;  %v288_v6 = vld [vmem:[%s3882_s2] sm:$0xff] }
 0x318   : > { %v3218_v9 = vpop.eup %3217  ;;  %2974 = vmatpush3.msra.mxu1 %v3656_v26  ;;  %2975 = vmatprep.mubr.msk.f32.mxu1 %vm3290_vm0, %v3291_v11  ;;  %v3129_v26 = vpack.c.bf16 %v2621_v25, %v2620_v23  ;;  %v3149_v8 = vpack.c.bf16 %v289_v7, %v288_v6  ;;  %v2684_v23 = vld [vmem:[%s3884_s4 + $0x1] ss:$0 sm:$0xff]  ;;  %v2685_v25 = vld [vmem:[%s3884_s4 + $0x2] ss:$0 sm:$0xff] }
 0x319   : > { %v1639_v12 = vmul.f32 %v3218_v9, %v3210_v58  ;;  %3124 = vmatprep.subr.bf16.mxu1 %v3289_v3  ;;  %v2683_v58 = vld [vmem:[%s3884_s4] ss:$0 sm:$0xff]  ;;  %v291_v9 = vld [vmem:[%s3882_s2 + $0x18] sm:$0xff] }
 0x31b   : > { %2971 = vmatmul.mubr.msk.f32.vlgmr.msra.gmra.mrb[20].mxu0 %vm1288_vm2, %v1639_v12  ;;  %v2630_v12 = vld [vmem:[%s3882_s2 + $0x20] sm:$0xff] }
 0x31c   : > { %v3220_v16 = vpop.eup %3219  ;;  %3119 = vmatpush3.bf16.xpose.msk.msra.mxu0 %vm3683_vm3, %v3117_v10  ;;  %2986 = vmatprep.mubr.msk.f32.mxu0 %vm3290_vm0, %v3291_v11  ;;  %v3155_v14 = vpack.c.bf16 %v2631_v13, %v2630_v12 }
 0x31d   : > { %v1640_v19 = vmul.f32 %v3220_v16, %v3212_v60  ;;  %3120 = vmatprep.subr.bf16.mxu0 %v3289_v3  ;;  %v2633_v16 = vld [vmem:[%s3882_s2 + $0x38] sm:$0xff] }
 0x31f   : > { %2976 = vmatmul.mubr.msk.f32.vlgmr.msra.gmra.mrb[16].mxu1 %vm1288_vm2, %v1640_v19 }
 0x320   : > { %3127 = vmatpush3.bf16.xpose.msk.msra.mxu1 %vm3683_vm3, %v3125_v17  ;;  %2997 = vmatprep.mubr.msk.f32.mxu1 %vm3290_vm0, %v3291_v11  ;;  %v3159_v17 = vpack.c.bf16 %v2633_v16, %v2632_v15 }
 0x321   : > { %3128 = vmatprep.subr.bf16.mxu1 %v3289_v3 }
 0x324   : > { %3123 = vmatpush3.bf16.xpose.msk.msra.mxu0 %vm3683_vm3, %v3121_v22 }
 0x325   : > { %3132 = vmatprep.subr.bf16.mxu0 %v3289_v3 }
 0x328   : > { %3131 = vmatpush3.bf16.xpose.msk.msra.mxu1 %vm3683_vm3, %v3129_v26 }
 0x329   : > { %3140 = vmatprep.subr.bf16.mxu1 %v3289_v3 }
 0x3e6   : > { %v1710_v31 = vpop.f32.mrb[18].mxu0 }
 0x3e7   : > { %v2962_v33 = vpop.f32.mrb[19].mxu0  ;;  %2987 = vmatmul.mubr.msk.f32.vlgmr.msra.gmra.mrb[22].mxu0 %vm1288_vm2, %v1710_v31 }
 0x3e8   : > { %3135 = vmatpush3.bf16.xpose.msk.msra.mxu0 %vm3683_vm3, %v3133_v29  ;;  %3008 = vmatprep.mubr.msk.f32.mxu0 %vm3290_vm0, %v3291_v11  ;;  %v2688_v33 = vld [vmem:[%s3884_s4 + $0x4] ss:$0 sm:$0xff] }
 0x3e9   : > { %3136 = vmatprep.subr.bf16.mxu0 %v3289_v3 }
 0x3ea   : > { %v1783_v32 = vpop.f32.mrb[14].mxu1 }
 0x3eb   : > { %v2967_v37 = vpop.f32.mrb[15].mxu1  ;;  %2998 = vmatmul.mubr.msk.f32.vlgmr.msra.gmra.mrb[18].mxu1 %vm1288_vm2, %v1783_v32 }
 0x3ec   : > { %3143 = vmatpush3.bf16.xpose.msk.msra.mxu1 %vm3683_vm3, %v3141_v34  ;;  %3019 = vmatprep.mubr.msk.f32.mxu1 %vm3290_vm0, %v3291_v11 }
 0x3ed   : > { %3144 = vmatprep.subr.bf16.mxu1 %v3289_v3 }
 0x3ee   : > { %v1856_v41 = vpop.f32.mrb[20].mxu0 }
 0x3ef   : > { %v2972_v42 = vpop.f32.mrb[21].mxu0 }
 0x3f0   : > { %3139 = vmatpush3.bf16.xpose.msk.msra.mxu0 %vm3683_vm3, %v3137_v38 }
 0x3f1   : > { %3148 = vmatprep.subr.bf16.mxu0 %v3289_v3 }
 0x3f2   : > { %v1929_v44 = vpop.f32.mrb[16].mxu1 }
 0x3f3   : > { %v2977_v45 = vpop.f32.mrb[17].mxu1 }
 0x3f4   : > { %3147 = vmatpush3.bf16.xpose.msk.msra.mxu1 %vm3683_vm3, %v3145_v43 }
 0x3f5   : > { %3154 = vmatprep.subr.bf16.mxu1 %v3289_v3 }
 0x3f7   : > { %3009 = vmatmul.mubr.msk.f32.vlgmr.msra.gmra.mrb[24].mxu0 %vm1288_vm2, %v1856_v41 }
 0x3f8   : > { %3030 = vmatprep.mubr.msk.f32.mxu0 %vm3290_vm0, %v3291_v11  ;;  %3150 = vmatpush3.bf16.msra.mxu0 %v3149_v8 }
 0x3f9   : > { %3151 = vmatprep.subr.bf16.mxu0 %v3289_v3 }
 0x3fb   : > { %3020 = vmatmul.mubr.msk.f32.vlgmr.msra.gmra.mrb[20].mxu1 %vm1288_vm2, %v1929_v44 }
 0x3fc   : > { %3041 = vmatprep.mubr.msk.f32.mxu1 %vm3290_vm0, %v3291_v11  ;;  %3157 = vmatpush3.bf16.xpose.msk.msra.mxu1 %vm3156_vm5, %v3155_v14 }
 0x3fd   : > { %3158 = vmatprep.subr.bf16.mxu1 %v3289_v3 }
 0x404   : > { %3161 = vmatpush3.bf16.xpose.msk.msra.mxu1 %vm3156_vm5, %v3159_v17 }
 0x4ba   : > { %v2014_v46 = vpop.f32.mrb[22].mxu0 }
 0x4bb   : > { %v2988_v47 = vpop.f32.mrb[23].mxu0  ;;  %v2273_v49 = vsel %vm354_vm1, %v2014_v46, 0.0 }
 0x4bc   : > { %v2694_v47 = vld [vmem:[%s3884_s4 + $0x5] ss:$0 sm:$0xff] }
 0x4be   : > { %v2099_v48 = vpop.f32.mrb[18].mxu1 }
 0x4bf   : > { %v2274_v50 = vsel %vm354_vm1, %v2099_v48, 0.0  ;;  %v2999_v51 = vpop.f32.mrb[19].mxu1 }
 0x4c0   : > { %v2275_v52 = vadd.f32 %v2274_v50, %v2273_v49  ;;  %v2695_v49 = vld [vmem:[%s3884_s4 + $0x6] ss:$0 sm:$0xff] }
 0x4ca   : > { %v2184_v53 = vpop.f32.mrb[24].mxu0 }
 0x4cb   : > { %v2276_v54 = vsel %vm354_vm1, %v2184_v53, 0.0  ;;  %v3010_v55 = vpop.f32.mrb[25].mxu0 }
 0x4cc   : > { %v2277_v56 = vadd.f32 %v2276_v54, %v2275_v52 }
 0x4ce   : > { %v2269_v57 = vpop.f32.mrb[20].mxu1 }
 0x4cf   : > { %v2278_v11 = vsel %vm354_vm1, %v2269_v57, 0.0  ;;  %v3021_v59 = vpop.f32.mrb[21].mxu1 }
 0x4d0   : > { %v2279_v60 = vadd.f32 %v2278_v11, %v2277_v56 }
 0x4d2   : > { %v2284_v61 = vadd.f32 %v2683_v58, %v2279_v60 }
 0x4d4   : > { %v2285_v62 = vadd.f32 %v2284_v61, %v3421_v18  ;;  %v290_v18 = vld [vmem:[%s3882_s2 + $0x10] sm:$0xff] }
 0x4d5   : > { %v3152_v10 = vpack.c.bf16 %v291_v9, %v290_v18 }
 0x4d6   : > { %v2286_v63 = vsel %vm354_vm1, %v2285_v62, 0.0 }
 0x4d7   : > { %2287 = vadd.xlane.f32.xlu0 %v2286_v63  ;;  %3153 = vmatpush3.bf16.msra.mxu0 %v3152_v10 }
 0x564   : > { %v2288_v0 = vpop.xlane.xlu0 %2287 }
 0x565   : > { %v2290_v1 = vmul.f32 0.03125, %v2288_v0 }
 0x567   : > { %v2291_v2 = vsub.f32 %v2285_v62, %v2290_v1 }
 0x569   : > { %v2292_v4 = vmul.f32 %v2291_v2, %v2291_v2 }
 0x56b   : > { %v2293_v5 = vsel %vm354_vm1, %v2292_v4, 0.0 }
 0x56c   : > { %2294 = vadd.xlane.f32.xlu1 %v2293_v5 }
 0x5f9   : > { %v2295_v19 = vpop.xlane.xlu1 %2294 }
 0x5fa   : > { %v2296_v20 = vmul.f32 0.03125, %v2295_v19 }
 0x5fc   : > { %v2297_v21 = vadd.f32 1e-05, %v2296_v20 }
 0x5fe   : > { %3221 = vrsqrt.f32 %v2297_v21 }
 0x608   : > { %v3222_v22 = vpop.eup %3221 }
 0x609   : > { %v2299_v3 = vmul.f32 %v3222_v22, %v2291_v2 }
 0x60b   : > { %v2304_v26 = vmul.f32 %v2684_v23, %v2299_v3 }
 0x60d   : > { %v2309_v27 = vadd.f32 %v2685_v25, %v2304_v26 }
 0x60f   : > { %3031 = vmatmul.mubr.msk.f32.vlgmr.msra.gmra.mrb[26].mxu0 %vm354_vm1, %v2309_v27 }
 0x6e2   : > { %v2383_v29 = vpop.f32.mrb[26].mxu0 }
 0x6e3   : > { %v2384_v24 = vadd.f32 %v2686_v28, %v2383_v29  ;;  %v3032_v30 = vpop.f32.mrb[27].mxu0 }
 0x6e5   : > { %v2387_v31 = vmax.f32 %v2384_v24, 0.0 }
 0x6e7   : > { %3042 = vmatmul.mubr.msk.f32.vlgmr.msra.gmra.mrb[22].mxu1 %vm2392_vm4, %v2387_v31 }
 0x7ba   : > { %v2474_v34 = vpop.f32.mrb[22].mxu1 }
 0x7bb   : > { %v2475_v35 = vadd.f32 %v2688_v33, %v2474_v34  ;;  %v3043_v36 = vpop.f32.mrb[23].mxu1 }
 0x7bd   : > { %v2478_v32 = vadd.f32 %v2475_v35, %v2309_v27 }
 0x7bf   : > { %v2479_v37 = vsel %vm354_vm1, %v2478_v32, 0.0 }
 0x7c0   : > { %2480 = vadd.xlane.f32.xlu0 %v2479_v37 }
 0x84d   : > { %v2481_v38 = vpop.xlane.xlu0 %2480 }
 0x84e   : > { %v2482_v39 = vmul.f32 0.03125, %v2481_v38 }
 0x850   : > { %v2483_v40 = vsub.f32 %v2478_v32, %v2482_v39 }
 0x852   : > { %v2484_v41 = vmul.f32 %v2483_v40, %v2483_v40 }
 0x854   : > { %v2485_v42 = vsel %vm354_vm1, %v2484_v41, 0.0 }
 0x855   : > { %2486 = vadd.xlane.f32.xlu1 %v2485_v42 }
 0x8e2   : > { %v2487_v43 = vpop.xlane.xlu1 %2486 }
 0x8e3   : > { %v2488_v44 = vmul.f32 0.03125, %v2487_v43 }
 0x8e5   : > { %v2489_v45 = vadd.f32 1e-05, %v2488_v44 }
 0x8e7   : > { %3223 = vrsqrt.f32 %v2489_v45 }
 0x8f1   : > { %v3224_v46 = vpop.eup %3223 }
 0x8f2   : > { %v2491_v48 = vmul.f32 %v3224_v46, %v2483_v40 }
 0x8f4   : > { %v2496_v50 = vmul.f32 %v2694_v47, %v2491_v48 }
 0x8f6   : > { %v2501_v51 = vadd.f32 %v2695_v49, %v2496_v50 }
 0x8f8   : > { %2502 = vst.msk [vmem:[%s215_s17] sm:$0xff] %vm354_vm1, %v2501_v51 }
 0x8f9   : > { %3238 = shalt.err (!%p3235_p3)
}
 0x8fa   : > { %s3239_s10 = scalar_lea.hbm %s3837_s30, 128  ;;  %s3243_s13 = scalar_lea.hbm %s3885_s5, 256 }
 0x8fb   : > { %p3240_p4 = scmp.ne.s32.totalorder %s3837_s30, %s3239_s10  ;;  %p3244_p9 = scmp.lt.u32.totalorder %s3837_s30, %s3885_s5 }
 0x8fc   : > { %p3245_p10 = scmp.lt.u32.totalorder %s3243_s13, %s3239_s10  ;;  %p3247_p12 = scmp.lt.u32.totalorder %s3239_s10, %s3837_s30 }
 0x8fd   : > { %p3241_p7 = pnand %p3240_p4, %p3362_p5 }
 0x8fe   : > { %p3246_p11 = por %p3245_p10, %p3244_p9 }
 0x8ff   : > { %p3242_p8 = pneg %p3241_p7 }
 0x900   : > { %p3248_p13 = por %p3247_p12, %p3246_p11 }
 0x902   : > { %p3249_p0 = pnand %p3248_p13, %p3242_p8 }
 0x904   : > { %3252 = shalt.err (!%p3249_p0)
}
 0x905   : > { %3162 = dma.vmem_to_hbm [thread:$0]  (%p3362_p5), %s3839_s23, 128, %s3837_s30, %s2504_s6  }
 0x906 PF: > { %p3168_p1 = scmp.ge.s32.totalorder %s3287_s21, 2  ;;  %s2529_s16 = sand.u32 1, %s3275_s18  }
 0x907   : > { %s2530_s17 = scalar_lea.sflag [#allocation3], %s2529_s16 }
 0x908   : > { %p3165_p2 = pnand %p3168_p1, %p3366_p6 }
 0x90a   : > { %3270 = dma.done.wait (!%p3165_p2), %s2530_s17, 128  }
 0x90b   : > { %3272 = vsyncadd (!%p3165_p2), %s2530_s17, 4294967168  ;;  %p15_p3 = scmp.ge.s32.totalorder %s3349_s24, 4   ;;  %s3890_s18 = smov %s3279_s19 }
 0x90c   : > { %s3891_s19 = smov %s3283_s20  ;;  %s3892_s20 = smov %s3360_s27 }
 0x90d   : > { %s3893_s21 = smov %s3349_s24  ;;  %17 = sbr.rel (!%p15_p3) target bundleno = 3 (0x3), region = 81 }
 0x914   :  { %2535 = vsyncpa [#allocation3], 1 }
 0x915   :  { %2537 = vsyncpa [#allocation3 + $0x1], 1 }

</bundles_post_ra>
